<compile_context>
chip_gen: v7x
topology: tpu7x:2x2x1
jax: 0.10.0
libtpu: 0.0.40
codegen_flags: <defaults>
</compile_context>

<pallas_src>
import jax
import jax.numpy as jnp
from jax.experimental import pallas as pl
from jax.experimental.pallas import tpu as pltpu


def _affine_kernel(x_ref, w_ref, b_ref, o_ref):
    # o = x @ Wc + bc : one MXU push (f32 accumulate) + one VPU broadcast add.
    o_ref[...] = (
        jnp.dot(x_ref[...], w_ref[...], preferred_element_type=jnp.float32)
        + b_ref[...]
    ).astype(o_ref.dtype)


def _round_up(n, m):
    return ((n + m - 1) // m) * m


def collapse_params(w1, b1, w2, b2):
    """Fold fc2(fc1(x)) into one affine (exact: the net is purely linear).
    Hoisted out of the forward pass — call once per parameter set."""
    hp = jax.lax.Precision.HIGHEST
    wc = jnp.dot(w1.T, w2.T, precision=hp)                 # (in_features, num_class)
    bc = (jnp.dot(b1, w2.T, precision=hp) + b2)[None, :]   # (1, num_class)
    return wc, bc


def _cost(B, in_features, num_class, itemsize):
    return pl.CostEstimate(
        flops=2 * B * in_features * num_class,
        transcendentals=0,
        bytes_accessed=(B * (in_features + num_class)
                        + (in_features + 1) * num_class) * itemsize,
    )


def _choose_batch_tile(B, max_tile):
    # Even number of row-tiles (>= 2) so both v7x TensorCores get equal work;
    # each tile is a multiple of 8 sublanes and at most ~max_tile rows.
    n_tiles = pl.cdiv(B, max_tile)
    n_tiles = max(2, n_tiles + (n_tiles % 2))
    return _round_up(pl.cdiv(B, n_tiles), 8)


def net_forward(x, wc, bc, *, batch_tile=4096, min_pallas_batch=128):
    """net1.forward: fc2(fc1(x)) == x @ wc + bc, (wc, bc) from collapse_params."""
    B, in_features = x.shape
    num_class = wc.shape[1]
    itemsize = jnp.dtype(x.dtype).itemsize

    # Tiny batches: pallas_call dispatch overhead dominates; plain XLA wins.
    if B < min_pallas_batch:
        return jnp.dot(x, wc, precision=jax.lax.Precision.HIGHEST) + bc

    if B <= batch_tile:
        # One VMEM-resident block: no grid machinery, no padding, no slicing.
        return pl.pallas_call(
            _affine_kernel,
            out_shape=jax.ShapeDtypeStruct((B, num_class), x.dtype),
            in_specs=[
                pl.BlockSpec(memory_space=pltpu.MemorySpace.VMEM),
                pl.BlockSpec(memory_space=pltpu.MemorySpace.VMEM),
                pl.BlockSpec(memory_space=pltpu.MemorySpace.VMEM),
            ],
            out_specs=pl.BlockSpec(memory_space=pltpu.MemorySpace.VMEM),
            cost_estimate=_cost(B, in_features, num_class, itemsize),
        )(x, wc, bc)

    # Large batch: tile only the batch axis. pl.cdiv grid + masked last block
    # means no input pad and no output row slice. Weights/bias use a constant
    # index_map so they stay VMEM-resident across grid steps (no re-DMA).
    tile = _choose_batch_tile(B, batch_tile)
    return pl.pallas_call(
        _affine_kernel,
        out_shape=jax.ShapeDtypeStruct((B, num_class), x.dtype),
        grid=(pl.cdiv(B, tile),),
        in_specs=[
            pl.BlockSpec((tile, in_features), lambda i: (i, 0)),
            pl.BlockSpec(wc.shape, lambda i: (0, 0)),
            pl.BlockSpec(bc.shape, lambda i: (0, 0)),
        ],
        out_specs=pl.BlockSpec((tile, num_class), lambda i: (i, 0)),
        compiler_params=pltpu.CompilerParams(
            dimension_semantics=("parallel",),  # batch tiles shard across TCs (v7x)
        ),
        cost_estimate=_cost(B, in_features, num_class, itemsize),
    )(x, wc, bc)


def init_params(key, num_class=10):
    # nn.Linear-style uniform(-1/sqrt(fan_in), 1/sqrt(fan_in)) init.
    # Note: fc3 exists in the PyTorch module but is never used in forward().
    k1, k2, k3, k4 = jax.random.split(key, 4)
    bound1 = 1.0 / jnp.sqrt(8.0)
    bound2 = 1.0 / jnp.sqrt(4.0)
    w1 = jax.random.uniform(k1, (4, 8), jnp.float32, -bound1, bound1)
    b1 = jax.random.uniform(k2, (4,), jnp.float32, -bound1, bound1)
    w2 = jax.random.uniform(k3, (num_class, 4), jnp.float32, -bound2, bound2)
    b2 = jax.random.uniform(k4, (num_class,), jnp.float32, -bound2, bound2)
    return w1, b1, w2, b2


if __name__ == "__main__":
    key = jax.random.PRNGKey(0)
    kx, kp, kx2 = jax.random.split(key, 3)

    w1, b1, w2, b2 = init_params(kp, num_class=10)
    wc, bc = collapse_params(w1, b1, w2, b2)   # hoisted: done once per param set

    # Small batch matching the module's toy shapes — grid-free Pallas path
    # (min_pallas_batch=0 forces the kernel even at this tiny size).
    batch = 2
    x = jax.random.normal(kx, (batch, 8), jnp.float32)
    out = jax.block_until_ready(net_forward(x, wc, bc, min_pallas_batch=0))
    ref = (x @ w1.T + b1) @ w2.T + b2
    assert out.shape == (batch, 10)
    assert jnp.allclose(out, ref, atol=1e-4, rtol=1e-4)

    # Larger, ragged batch exercises the batch-tiled grid path: even grid
    # (4 tiles of 256 rows) with a masked partial last block, no pad/slice.
    big_batch = 1000
    xb = jax.random.normal(kx2, (big_batch, 8), jnp.float32)
    out_b = jax.block_until_ready(net_forward(xb, wc, bc, batch_tile=256))
    ref_b = (xb @ w1.T + b1) @ w2.T + b2
    assert out_b.shape == (big_batch, 10)
    assert jnp.allclose(out_b, ref_b, atol=1e-4, rtol=1e-4)

    print("KERNEL_OK")
</pallas_src>

<mosaic_0001>
module attributes {stable_mosaic.version = 11 : i64} {
  func.func @_affine_kernel(%arg0: memref<2x8xf32, #tpu.memory_space<vmem>>, %arg1: memref<8x10xf32, #tpu.memory_space<vmem>>, %arg2: memref<1x10xf32, #tpu.memory_space<vmem>>, %arg3: memref<2x10xf32, #tpu.memory_space<vmem>>) attributes {dimension_semantics = [], scalar_prefetch = 0 : i64, scratch_operands = 0 : i64, tpu.core_type = #tpu.core_type<tc>} {
    %c0 = arith.constant 0 : index
    %c0_0 = arith.constant 0 : index
    %0 = vector.load %arg0[%c0, %c0_0] : memref<2x8xf32, #tpu.memory_space<vmem>>, vector<2x8xf32>
    %c0_1 = arith.constant 0 : index
    %c0_2 = arith.constant 0 : index
    %1 = vector.load %arg1[%c0_1, %c0_2] : memref<8x10xf32, #tpu.memory_space<vmem>>, vector<8x10xf32>
    %cst = arith.constant dense<0.000000e+00> : vector<2x10xf32>
    %2 = tpu.matmul %0, %1, %cst {dimension_numbers = #tpu.dot_dimension_numbers<[1], [0], [0], [1], [0, 0, 1, 1], [], []>} : vector<2x8xf32>, vector<8x10xf32>, vector<2x10xf32> -> vector<2x10xf32>
    %c0_3 = arith.constant 0 : index
    %c0_4 = arith.constant 0 : index
    %3 = vector.load %arg2[%c0_3, %c0_4] : memref<1x10xf32, #tpu.memory_space<vmem>>, vector<1x10xf32>
    %4 = vector.broadcast %3 : vector<1x10xf32> to vector<2x10xf32>
    %5 = arith.addf %2, %4 : vector<2x10xf32>
    %c0_5 = arith.constant 0 : index
    %c0_6 = arith.constant 0 : index
    %6 = vector.load %arg3[%c0_5, %c0_6] : memref<2x10xf32, #tpu.memory_space<vmem>>, vector<2x10xf32>
    tpu.vector_store %arg3[%c0_5, %c0_6], %5 {strides = array<i32>} : memref<2x10xf32, #tpu.memory_space<vmem>>, vector<2x10xf32>,
    return
  }
}

</mosaic_0001>

<bundles_post_ra>
// kernel: tpu_custom_call.1
= control target key start
LH: loop header
LB: loop body
LE: loop exit
PB: predicated region body
PF: predicated region fallthrough
CT: control target
= control target key end

     0   :  { %8 = vsyncpa [#allocation3], 0  ;;  %s290_s0 = inlined_call_operand.hbm [shape: f32[2,8], index: 0, kind: input, shape index: {}]   ;;  %s291_s1 = inlined_call_operand.hbm [shape: f32[8,10], index: 1, kind: input, shape index: {}]   ;;  %s292_s2 = inlined_call_operand.vmem [shape: f32[1,10], index: 2, kind: input, shape index: {}]   ;;  %s293_s3 = inlined_call_operand.hbm [shape: f32[2,10], index: 3, kind: output, shape index: {}]  }
   0x1   :  { %9 = vsyncpa [#allocation6], 0 }
   0x2   :  { %10 = vsyncpa [#allocation4], 0  ;;  %s226_s12 = smov [#allocation2]   ;;  %s227_s14 = smov [#allocation5]  }
   0x3   :  { %s17_s13 = sshll.u32 %s226_s12, 4  ;;  %s27_s15 = sshll.u32 %s227_s14, 4  ;;  %s18_s13 = int_to_ptr.vmem [resolvable:$true] %s17_s13  ;;  %s28_s15 = int_to_ptr.vmem [resolvable:$true] %s27_s15 }
   0x4   :  { %s154_s18 = scalar_lea.hbm %s290_s0, 32 }
   0x5   :  { %p155_p0 = scmp.ne.s32.totalorder %s290_s0, %s154_s18  ;;  %p158_p1 = scmp.lt.u32.totalorder %s154_s18, %s290_s0 }
   0x7   :  { %p160_p2 = pnand %p158_p1, %p155_p0 }
   0x9   :  { %163 = shalt.err (!%p160_p2)
}
   0xa   :  { %s164_s23 = scalar_lea.vmem %s18_s13, 32  ;;  %p169_p4 = scmp.lt.s32.totalorder %s18_s13, %s18_s13 }
   0xb   :  { %p165_p3 = scmp.ne.s32.totalorder %s18_s13, %s164_s23  ;;  %p170_p5 = scmp.lt.s32.totalorder %s164_s23, %s164_s23 }
   0xd   :  { %p171_p6 = por %p170_p5, %p169_p4 }
   0xf   :  { %p172_p7 = pnand %p171_p6, %p165_p3 }
  0x11   :  { %175 = shalt.err (!%p172_p7)
}
  0x12   :  { %20 = dma.hbm_to_vmem [thread:$0]  %s290_s0, 32, %s18_s13, [#allocation3]  }
  0x13   :  { %s176_s28 = scalar_lea.hbm %s291_s1, 128 }
  0x14   :  { %p177_p8 = scmp.ne.s32.totalorder %s291_s1, %s176_s28  ;;  %p180_p9 = scmp.lt.u32.totalorder %s176_s28, %s291_s1 }
  0x16   :  { %p182_p10 = pnand %p180_p9, %p177_p8 }
  0x18   :  { %185 = shalt.err (!%p182_p10)
}
  0x19   :  { %s186_s6 = scalar_lea.vmem %s28_s15, 128  ;;  %p191_p12 = scmp.lt.s32.totalorder %s28_s15, %s28_s15 }
  0x1a   :  { %p187_p11 = scmp.ne.s32.totalorder %s28_s15, %s186_s6  ;;  %p192_p13 = scmp.lt.s32.totalorder %s186_s6, %s186_s6 }
  0x1c   :  { %p193_p0 = por %p192_p13, %p191_p12 }
  0x1e   :  { %p194_p1 = pnand %p193_p0, %p187_p11 }
  0x20   :  { %197 = shalt.err (!%p194_p1)
}
  0x21   :  { %30 = dma.hbm_to_vmem [thread:$0]  %s291_s1, 128, %s28_s15, [#allocation6]  }
  0x22   :  { %220 = dma.done.wait [#allocation3], 32  }
  0x23   :  { %221 = vsyncadd [#allocation3], 4294967264 }
  0x24   :  { %222 = dma.done.wait [#allocation6], 128  }
  0x25   :  { %223 = vsyncadd [#allocation6], 4294967168  ;;  %v228_v0 = vmov 0.0   ;;  %vm229_vm0 = vmmov 0   ;;  %vm48_vm1 = vcmask 64512   ;;  %v40_v1 = vld [vmem:[#allocation5] sm:$0xff] }
  0x26   :  { %144 = vmatprep.subr.mxu0 %v228_v0  ;;  %146 = vmatprep.mubr.msk.f32.mxu0 %vm229_vm0, %v228_v0  ;;  %v39_v2 = vld [vmem:[#allocation2] sm:$0x3]  ;;  %s230_s10 = smov [#allocation7]   ;;  %vm122_vm2 = vcmask 74752  }
  0x27   :  { %145 = vmatpush3.msra.mxu0 %v40_v1  ;;  %v140_v3 = vld [vmem:[%s292_s2] ss:$0 sm:$0xff]  ;;  %s130_s11 = sshll.u32 %s230_s10, 4  ;;  %s131_s11 = int_to_ptr.vmem [resolvable:$true] %s130_s11 }
  0x28   :  { %147 = vmatmul.mubr.msk.f32.vlgmr.msra.gmra.mrb[0].mxu0 %vm48_vm1, %v39_v2  ;;  %s198_s1 = scalar_lea.vmem %s131_s11, 32  ;;  %p203_p3 = scmp.lt.s32.totalorder %s131_s11, %s131_s11 }
  0x29   :  { %p199_p2 = scmp.ne.s32.totalorder %s131_s11, %s198_s1  ;;  %p204_p4 = scmp.lt.s32.totalorder %s198_s1, %s198_s1 }
  0x2b   :  { %p205_p5 = por %p204_p4, %p203_p3 }
  0x2d   :  { %p206_p6 = pnand %p205_p5, %p199_p2 }
  0xfb   :  { %v118_v4 = vpop.f32.mrb[0].mxu0 }
  0xfc   :  { %v119_v5 = vadd.f32 %v140_v3, %v118_v4  ;;  %v148_v6 = vpop.f32.mrb[1].mxu0 }
  0xfe   :  { %123 = vst.msk [vmem:[#allocation7] sm:$0x3] %vm122_vm2, %v119_v5 }
  0xff   :  { %209 = shalt.err (!%p206_p6)
}
 0x100   :  { %s210_s14 = scalar_lea.hbm %s293_s3, 32 }
 0x101   :  { %p211_p7 = scmp.ne.s32.totalorder %s293_s3, %s210_s14  ;;  %p214_p8 = scmp.lt.u32.totalorder %s210_s14, %s293_s3 }
 0x103   :  { %p216_p9 = pnand %p214_p8, %p211_p7 }
 0x105   :  { %219 = shalt.err (!%p216_p9)
}
 0x106   :  { %133 = dma.vmem_to_hbm [thread:$0]  %s131_s11, 32, %s293_s3, [#allocation4]  }
 0x107   :  { %224 = dma.done.wait [#allocation4], 32  }
 0x108   :  { %225 = vsyncadd [#allocation4], 4294967264 }
 0x109   :  { %137 = vsyncpa [#allocation3], 1 }
 0x10a   :  { %138 = vsyncpa [#allocation6], 1 }
 0x10b   :  { %139 = vsyncpa [#allocation4], 1 }

</bundles_post_ra>
